<compile_context>
chip_gen: v7x
topology: tpu7x:2x2x1
jax: 0.10.0
libtpu: 0.0.40
codegen_flags: <defaults>
</compile_context>

<pallas_src>
import jax
import jax.numpy as jnp
from jax.experimental import pallas as pl
from jax.experimental.pallas import tpu as pltpu


def _round_up(n, m):
    return ((n + m - 1) // m) * m


def _pad_to(a, shape):
    return jnp.pad(a, [(0, t - s) for s, t in zip(a.shape, shape)])


# --------------------------------------------------------------------------- #
# Kernel
# --------------------------------------------------------------------------- #
def mlp_kernel(x_ref, w1_ref, b1_ref, w2_ref, b2_ref, out_ref, acc_ref):
    k = pl.program_id(1)

    @pl.when(k == 0)
    def _init():
        acc_ref[...] = jnp.zeros_like(acc_ref)

    # fc1 partial product: cast x to bf16 in-kernel (avoids a separate XLA
    # f32->bf16 HBM pass over the activations); accumulate in f32 on the MXU.
    acc_ref[...] += jnp.dot(
        x_ref[...].astype(jnp.bfloat16), w1_ref[...],
        preferred_element_type=jnp.float32)

    @pl.when(k == pl.num_programs(1) - 1)
    def _finalize():
        # Bias + ReLU in f32 on the VPU (v5e-safe; VPU slots are free filler
        # next to the MXU pushes).
        # TODO(synk): on v6e/v7x a bf16 epilogue would halve this intermediate.
        h = jnp.maximum(acc_ref[...] + b1_ref[...], 0.0)
        y = jnp.dot(h.astype(w2_ref.dtype), w2_ref[...],
                    preferred_element_type=jnp.float32)
        out_ref[...] = (y + b2_ref[...]).astype(out_ref.dtype)


# --------------------------------------------------------------------------- #
# One-time parameter preparation (hoisted out of the per-call path)
# --------------------------------------------------------------------------- #
def prepare_mlp_params(w1, b1, w2, b2, *, weight_budget_bytes=24 << 20,
                       force_tk=None):
    """Pad to (8,128)-aligned shapes, cast MXU operands to bf16, pick K tiling.

    weight_budget_bytes is a conservative cross-chip budget for VMEM-resident
    bf16 weights (v7x has only 64 MiB of VMEM total).
    TODO(synk): derive the budget per chip via pltpu.get_tpu_info(), and also
    tile hidden / d_out for MLPs whose w2 alone exceeds the budget.
    """
    d_in, hidden = w1.shape
    d_out = w2.shape[1]
    d_in_p = _round_up(d_in, 128)
    hid_p = _round_up(hidden, 128)
    d_out_p = _round_up(d_out, 128)

    w1_bytes = d_in_p * hid_p * 2
    w2_bytes = hid_p * d_out_p * 2
    if force_tk is not None:
        tk = _round_up(force_tk, 128)
    elif w1_bytes + w2_bytes <= weight_budget_bytes:
        tk = d_in_p                         # all weights VMEM-resident, 1 K step
    else:
        # K-tile fc1's contraction dim so double-buffered w1 tiles + the
        # resident w2 stay inside the budget.
        tk = 2048
        while tk > 128 and 2 * tk * hid_p * 2 + w2_bytes > weight_budget_bytes:
            tk //= 2
    d_in_p = _round_up(d_in_p, tk)

    # Zero padding keeps the math exact (padded rows/cols contribute 0).
    w1_p = _pad_to(w1, (d_in_p, hid_p)).astype(jnp.bfloat16)
    w2_p = _pad_to(w2, (hid_p, d_out_p)).astype(jnp.bfloat16)
    b1_p = _pad_to(b1.reshape(1, -1).astype(jnp.float32), (1, hid_p))
    b2_p = _pad_to(b2.reshape(1, -1).astype(jnp.float32), (1, d_out_p))
    return dict(w1=w1_p, b1=b1_p, w2=w2_p, b2=b2_p,
                d_in=d_in, d_out=d_out, tk=tk)


def _vmem_limit_bytes(tm, tk, hid_p, d_out_p, k_steps):
    w1_bufs = 1 if k_steps == 1 else 2
    need = (2 * tm * tk * 4                 # f32 x tiles (double-buffered)
            + w1_bufs * tk * hid_p * 2      # bf16 w1 tile(s)
            + hid_p * 4 + d_out_p * 4       # f32 biases (single-buffered)
            + hid_p * d_out_p * 2           # bf16 w2 (resident)
            + 2 * tm * d_out_p * 4          # f32 out tiles (double-buffered)
            + tm * hid_p * 4                # f32 accumulator scratch
            + tm * hid_p * (4 + 2))         # epilogue h (f32) + bf16 cast temp
    need = int(need * 1.25) + (2 << 20)     # ~25% headroom + slack
    return max(16 << 20, min(need, 128 << 20))


# --------------------------------------------------------------------------- #
# Forward wrapper
# --------------------------------------------------------------------------- #
def mlp_forward(x_nchw, params, *, block_m=512):
    """fc2(relu(fc1(x.view(B, -1)))) — identical math to the PyTorch module."""
    B = x_nchw.shape[0]
    d_in, d_out, tk = params["d_in"], params["d_out"], params["tk"]
    w1_p, b1_p, w2_p, b2_p = params["w1"], params["b1"], params["w2"], params["b2"]
    d_in_p, hid_p = w1_p.shape
    d_out_p = w2_p.shape[1]
    k_steps = d_in_p // tk

    # ---- batch tiling ------------------------------------------------------
    b_pad = _round_up(B, 8)
    if b_pad > block_m:
        tm = block_m                        # large batch: 512-row tiles
        b_pad = _round_up(b_pad, tm)
    elif b_pad >= 16:
        # At least 2 batch tiles so both v7x TensorCores get work; harmless on
        # single-TC v5e/v6e because the weights stay VMEM-resident anyway.
        tm = _round_up((b_pad + 1) // 2, 8)
        b_pad = _round_up(b_pad, tm)
    else:
        tm = b_pad                          # tiny inference batch: single tile

    # Flatten like x.view(B, -1); zero-pad to the aligned shape.  x stays f32
    # (cast to bf16 inside the kernel), so HBM reads it exactly once.
    x2d = _pad_to(x_nchw.reshape(B, -1).astype(jnp.float32), (b_pad, d_in_p))

    grid = (b_pad // tm, k_steps)
    vmem_limit = _vmem_limit_bytes(tm, tk, hid_p, d_out_p, k_steps)

    def build_call(use_buffered):
        def resident(shape, imap):
            # Grid-invariant blocks: single-buffer them (revolving buffers buy
            # nothing for a constant index_map) when supported.
            if use_buffered:
                return pl.BlockSpec(shape, imap, pipeline_mode=pl.Buffered(1))
            return pl.BlockSpec(shape, imap)

        if k_steps == 1:
            w1_spec = resident((tk, hid_p), lambda i, k: (k, 0))
        else:
            w1_spec = pl.BlockSpec((tk, hid_p), lambda i, k: (k, 0))

        return pl.pallas_call(
            mlp_kernel,
            out_shape=jax.ShapeDtypeStruct((b_pad, d_out_p), jnp.float32),
            grid_spec=pltpu.PrefetchScalarGridSpec(
                num_scalar_prefetch=0,
                grid=grid,
                in_specs=[
                    pl.BlockSpec((tm, tk), lambda i, k: (i, k)),
                    w1_spec,
                    resident((1, hid_p), lambda i, k: (0, 0)),
                    resident((hid_p, d_out_p), lambda i, k: (0, 0)),
                    resident((1, d_out_p), lambda i, k: (0, 0)),
                ],
                out_specs=pl.BlockSpec((tm, d_out_p), lambda i, k: (i, 0)),
                scratch_shapes=[pltpu.VMEM((tm, hid_p), jnp.float32)],
            ),
            compiler_params=pltpu.CompilerParams(
                dimension_semantics=("parallel", "arbitrary"),
                vmem_limit_bytes=vmem_limit,
            ),
        )

    try:
        out = build_call(True)(x2d, w1_p, b1_p, w2_p, b2_p)
    except Exception:  # pipeline_mode support varies by jax version; fall back.
        out = build_call(False)(x2d, w1_p, b1_p, w2_p, b2_p)

    # Strip alignment padding outside the kernel.
    return out[:B, :d_out]


# --------------------------------------------------------------------------- #
# Demo / self-check
# --------------------------------------------------------------------------- #
if __name__ == "__main__":
    key = jax.random.PRNGKey(0)
    (kx, kw1, kb1, kw2, kb2,
     kx2, kw3, kb3, kw4, kb4) = jax.random.split(key, 10)

    # ---- Test 1: shapes consistent with the module (resident-weights path) --
    B, C, H, W = 2, 1, 8, 8                 # input_dim = 64
    input_dim, hidden_dim, output_dim = C * H * W, 32, 10

    x = jax.random.normal(kx, (B, C, H, W), dtype=jnp.float32)
    w1 = jax.random.normal(kw1, (input_dim, hidden_dim), dtype=jnp.float32) * 0.05
    b1 = jax.random.normal(kb1, (hidden_dim,), dtype=jnp.float32) * 0.05
    w2 = jax.random.normal(kw2, (hidden_dim, output_dim), dtype=jnp.float32) * 0.05
    b2 = jax.random.normal(kb2, (output_dim,), dtype=jnp.float32) * 0.05

    params = prepare_mlp_params(w1, b1, w2, b2)      # pad/cast once, not per call
    out = jax.block_until_ready(mlp_forward(x, params))

    ref = jnp.maximum(x.reshape(B, -1) @ w1 + b1, 0.0) @ w2 + b2
    assert out.shape == (B, output_dim)
    # Tolerance widened vs. pure-f32 because MXU operands are bf16 (f32 accum).
    assert jnp.allclose(out, ref, atol=3e-2, rtol=3e-2)

    # ---- Test 2: exercise the K-tiled accumulator path + batch splitting ----
    B2, d_in2, hid2, d_out2 = 16, 384, 64, 10
    x2 = jax.random.normal(kx2, (B2, d_in2), dtype=jnp.float32)
    w1b = jax.random.normal(kw3, (d_in2, hid2), dtype=jnp.float32) * 0.05
    b1b = jax.random.normal(kb3, (hid2,), dtype=jnp.float32) * 0.05
    w2b = jax.random.normal(kw4, (hid2, d_out2), dtype=jnp.float32) * 0.05
    b2b = jax.random.normal(kb4, (d_out2,), dtype=jnp.float32) * 0.05

    params2 = prepare_mlp_params(w1b, b1b, w2b, b2b, force_tk=128)  # 3 K steps
    out2 = jax.block_until_ready(mlp_forward(x2, params2))

    ref2 = jnp.maximum(x2 @ w1b + b1b, 0.0) @ w2b + b2b
    assert out2.shape == (B2, d_out2)
    assert jnp.allclose(out2, ref2, atol=5e-2, rtol=5e-2)

    print("KERNEL_OK")
</pallas_src>

<mosaic_0001>
module attributes {stable_mosaic.version = 11 : i64} {
  func.func @mlp_kernel(%arg0: i32, %arg1: i32, %arg2: memref<8x128xf32, #tpu.memory_space<vmem>>, %arg3: memref<128x128xbf16, #tpu.memory_space<vmem>>, %arg4: memref<1x128xf32, #tpu.memory_space<vmem>>, %arg5: memref<128x128xbf16, #tpu.memory_space<vmem>>, %arg6: memref<1x128xf32, #tpu.memory_space<vmem>>, %arg7: memref<8x128xf32, #tpu.memory_space<vmem>>, %arg8: memref<8x128xf32, #tpu.memory_space<vmem>>) attributes {dimension_semantics = [#tpu.dimension_semantics<parallel>, #tpu.dimension_semantics<arbitrary>], iteration_bounds = array<i64: 1, 1>, scalar_prefetch = 0 : i64, scratch_operands = 1 : i64, tpu.core_type = #tpu.core_type<tc>, window_params = [{transform_indices = @transform_0, window_bounds = array<i64: 8, 128>}, {pipeline_mode = #tpu.pipeline_mode<synchronous>, transform_indices = @transform_1, window_bounds = array<i64: 128, 128>}, {pipeline_mode = #tpu.pipeline_mode<synchronous>, transform_indices = @transform_2, window_bounds = array<i64: 1, 128>}, {pipeline_mode = #tpu.pipeline_mode<synchronous>, transform_indices = @transform_3, window_bounds = array<i64: 128, 128>}, {pipeline_mode = #tpu.pipeline_mode<synchronous>, transform_indices = @transform_4, window_bounds = array<i64: 1, 128>}, {transform_indices = @transform_5, window_bounds = array<i64: 8, 128>}]} {
    %c0_i32 = arith.constant 0 : i32
    %0 = arith.cmpi eq, %arg1, %c0_i32 : i32
    %1 = arith.extui %0 : i1 to i32
    %c0_i32_0 = arith.constant 0 : i32
    %2 = arith.cmpi ne, %1, %c0_i32_0 : i32
    scf.if %2 {
      %cst_10 = arith.constant 0.000000e+00 : f32
      %13 = vector.broadcast %cst_10 : f32 to vector<8x128xf32>
      %c0_11 = arith.constant 0 : index
      %c0_12 = arith.constant 0 : index
      %14 = vector.load %arg8[%c0_11, %c0_12] : memref<8x128xf32, #tpu.memory_space<vmem>>, vector<8x128xf32>
      tpu.vector_store %arg8[%c0_11, %c0_12], %13 {strides = array<i32>} : memref<8x128xf32, #tpu.memory_space<vmem>>, vector<8x128xf32>,
    } else {
    }
    %c0 = arith.constant 0 : index
    %c0_1 = arith.constant 0 : index
    %3 = vector.load %arg8[%c0, %c0_1] : memref<8x128xf32, #tpu.memory_space<vmem>>, vector<8x128xf32>
    %c0_2 = arith.constant 0 : index
    %c0_3 = arith.constant 0 : index
    %4 = vector.load %arg2[%c0_2, %c0_3] : memref<8x128xf32, #tpu.memory_space<vmem>>, vector<8x128xf32>
    %5 = arith.truncf %4 : vector<8x128xf32> to vector<8x128xbf16>
    %c0_4 = arith.constant 0 : index
    %c0_5 = arith.constant 0 : index
    %6 = vector.load %arg3[%c0_4, %c0_5] : memref<128x128xbf16, #tpu.memory_space<vmem>>, vector<128x128xbf16>
    %cst = arith.constant dense<0.000000e+00> : vector<8x128xf32>
    %7 = tpu.matmul %5, %6, %cst {dimension_numbers = #tpu.dot_dimension_numbers<[1], [0], [0], [1], [0, 0, 1, 1], [], []>} : vector<8x128xbf16>, vector<128x128xbf16>, vector<8x128xf32> -> vector<8x128xf32>
    %8 = arith.addf %3, %7 : vector<8x128xf32>
    %c0_6 = arith.constant 0 : index
    %c0_7 = arith.constant 0 : index
    %9 = vector.load %arg8[%c0_6, %c0_7] : memref<8x128xf32, #tpu.memory_space<vmem>>, vector<8x128xf32>
    tpu.vector_store %arg8[%c0_6, %c0_7], %8 {strides = array<i32>} : memref<8x128xf32, #tpu.memory_space<vmem>>, vector<8x128xf32>,
    %c0_i32_8 = arith.constant 0 : i32
    %10 = arith.cmpi eq, %arg1, %c0_i32_8 : i32
    %11 = arith.extui %10 : i1 to i32
    %c0_i32_9 = arith.constant 0 : i32
    %12 = arith.cmpi ne, %11, %c0_i32_9 : i32
    scf.if %12 {
      %c0_10 = arith.constant 0 : index
      %c0_11 = arith.constant 0 : index
      %13 = vector.load %arg8[%c0_10, %c0_11] : memref<8x128xf32, #tpu.memory_space<vmem>>, vector<8x128xf32>
      %c0_12 = arith.constant 0 : index
      %c0_13 = arith.constant 0 : index
      %14 = vector.load %arg4[%c0_12, %c0_13] : memref<1x128xf32, #tpu.memory_space<vmem>>, vector<1x128xf32>
      %15 = vector.broadcast %14 : vector<1x128xf32> to vector<8x128xf32>
      %16 = arith.addf %13, %15 : vector<8x128xf32>
      %cst_14 = arith.constant 0.000000e+00 : f32
      %17 = vector.broadcast %cst_14 : f32 to vector<8x128xf32>
      %18 = arith.maximumf %16, %17 : vector<8x128xf32>
      %19 = arith.truncf %18 : vector<8x128xf32> to vector<8x128xbf16>
      %c0_15 = arith.constant 0 : index
      %c0_16 = arith.constant 0 : index
      %20 = vector.load %arg5[%c0_15, %c0_16] : memref<128x128xbf16, #tpu.memory_space<vmem>>, vector<128x128xbf16>
      %cst_17 = arith.constant dense<0.000000e+00> : vector<8x128xf32>
      %21 = tpu.matmul %19, %20, %cst_17 {dimension_numbers = #tpu.dot_dimension_numbers<[1], [0], [0], [1], [0, 0, 1, 1], [], []>} : vector<8x128xbf16>, vector<128x128xbf16>, vector<8x128xf32> -> vector<8x128xf32>
      %c0_18 = arith.constant 0 : index
      %c0_19 = arith.constant 0 : index
      %22 = vector.load %arg6[%c0_18, %c0_19] : memref<1x128xf32, #tpu.memory_space<vmem>>, vector<1x128xf32>
      %23 = vector.broadcast %22 : vector<1x128xf32> to vector<8x128xf32>
      %24 = arith.addf %21, %23 : vector<8x128xf32>
      %c0_20 = arith.constant 0 : index
      %c0_21 = arith.constant 0 : index
      %25 = vector.load %arg7[%c0_20, %c0_21] : memref<8x128xf32, #tpu.memory_space<vmem>>, vector<8x128xf32>
      tpu.vector_store %arg7[%c0_20, %c0_21], %24 {strides = array<i32>} : memref<8x128xf32, #tpu.memory_space<vmem>>, vector<8x128xf32>,
    } else {
    }
    return
  }
  func.func @transform_0(%arg0: i32, %arg1: i32) -> (i32, i32) {
    %c0_i32 = arith.constant 0 : i32
    return %arg0, %arg1 : i32, i32
  }
  func.func @transform_1(%arg0: i32, %arg1: i32) -> (i32, i32) {
    %c0_i32 = arith.constant 0 : i32
    %c0_i32_0 = arith.constant 0 : i32
    return %arg1, %c0_i32 : i32, i32
  }
  func.func @transform_2(%arg0: i32, %arg1: i32) -> (i32, i32) {
    %c0_i32 = arith.constant 0 : i32
    %c0_i32_0 = arith.constant 0 : i32
    %c0_i32_1 = arith.constant 0 : i32
    return %c0_i32, %c0_i32_0 : i32, i32
  }
  func.func @transform_3(%arg0: i32, %arg1: i32) -> (i32, i32) {
    %c0_i32 = arith.constant 0 : i32
    %c0_i32_0 = arith.constant 0 : i32
    %c0_i32_1 = arith.constant 0 : i32
    return %c0_i32, %c0_i32_0 : i32, i32
  }
  func.func @transform_4(%arg0: i32, %arg1: i32) -> (i32, i32) {
    %c0_i32 = arith.constant 0 : i32
    %c0_i32_0 = arith.constant 0 : i32
    %c0_i32_1 = arith.constant 0 : i32
    return %c0_i32, %c0_i32_0 : i32, i32
  }
  func.func @transform_5(%arg0: i32, %arg1: i32) -> (i32, i32) {
    %c0_i32 = arith.constant 0 : i32
    %c0_i32_0 = arith.constant 0 : i32
    return %arg0, %c0_i32 : i32, i32
  }
}

module attributes {stable_mosaic.version = 11 : i64} {
  func.func @mlp_kernel(%arg0: i32, %arg1: i32, %arg2: memref<8x128xf32, #tpu.memory_space<vmem>>, %arg3: memref<128x128xbf16, #tpu.memory_space<vmem>>, %arg4: memref<1x128xf32, #tpu.memory_space<vmem>>, %arg5: memref<128x128xbf16, #tpu.memory_space<vmem>>, %arg6: memref<1x128xf32, #tpu.memory_space<vmem>>, %arg7: memref<8x128xf32, #tpu.memory_space<vmem>>, %arg8: memref<8x128xf32, #tpu.memory_space<vmem>>) attributes {dimension_semantics = [#tpu.dimension_semantics<parallel>, #tpu.dimension_semantics<arbitrary>], iteration_bounds = array<i64: 1, 1>, scalar_prefetch = 0 : i64, scratch_operands = 1 : i64, tpu.core_type = #tpu.core_type<tc>, window_params = [{transform_indices = @transform_0, window_bounds = array<i64: 8, 128>}, {transform_indices = @transform_1, window_bounds = array<i64: 128, 128>}, {pipeline_mode = #tpu.pipeline_mode<synchronous>, transform_indices = @transform_2, window_bounds = array<i64: 1, 128>}, {pipeline_mode = #tpu.pipeline_mode<synchronous>, transform_indices = @transform_3, window_bounds = array<i64: 128, 128>}, {pipeline_mode = #tpu.pipeline_mode<synchronous>, transform_indices = @transform_4, window_bounds = array<i64: 1, 128>}, {transform_indices = @transform_5, window_bounds = array<i64: 8, 128>}]} {
    %c0_i32 = arith.constant 0 : i32
    %0 = arith.cmpi eq, %arg1, %c0_i32 : i32
    %1 = arith.extui %0 : i1 to i32
    %c0_i32_0 = arith.constant 0 : i32
    %2 = arith.cmpi ne, %1, %c0_i32_0 : i32
    scf.if %2 {
      %cst_10 = arith.constant 0.000000e+00 : f32
      %13 = vector.broadcast %cst_10 : f32 to vector<8x128xf32>
      %c0_11 = arith.constant 0 : index
      %c0_12 = arith.constant 0 : index
      %14 = vector.load %arg8[%c0_11, %c0_12] : memref<8x128xf32, #tpu.memory_space<vmem>>, vector<8x128xf32>
      tpu.vector_store %arg8[%c0_11, %c0_12], %13 {strides = array<i32>} : memref<8x128xf32, #tpu.memory_space<vmem>>, vector<8x128xf32>,
    } else {
    }
    %c0 = arith.constant 0 : index
    %c0_1 = arith.constant 0 : index
    %3 = vector.load %arg8[%c0, %c0_1] : memref<8x128xf32, #tpu.memory_space<vmem>>, vector<8x128xf32>
    %c0_2 = arith.constant 0 : index
    %c0_3 = arith.constant 0 : index
    %4 = vector.load %arg2[%c0_2, %c0_3] : memref<8x128xf32, #tpu.memory_space<vmem>>, vector<8x128xf32>
    %5 = arith.truncf %4 : vector<8x128xf32> to vector<8x128xbf16>
    %c0_4 = arith.constant 0 : index
    %c0_5 = arith.constant 0 : index
    %6 = vector.load %arg3[%c0_4, %c0_5] : memref<128x128xbf16, #tpu.memory_space<vmem>>, vector<128x128xbf16>
    %cst = arith.constant dense<0.000000e+00> : vector<8x128xf32>
    %7 = tpu.matmul %5, %6, %cst {dimension_numbers = #tpu.dot_dimension_numbers<[1], [0], [0], [1], [0, 0, 1, 1], [], []>} : vector<8x128xbf16>, vector<128x128xbf16>, vector<8x128xf32> -> vector<8x128xf32>
    %8 = arith.addf %3, %7 : vector<8x128xf32>
    %c0_6 = arith.constant 0 : index
    %c0_7 = arith.constant 0 : index
    %9 = vector.load %arg8[%c0_6, %c0_7] : memref<8x128xf32, #tpu.memory_space<vmem>>, vector<8x128xf32>
    tpu.vector_store %arg8[%c0_6, %c0_7], %8 {strides = array<i32>} : memref<8x128xf32, #tpu.memory_space<vmem>>, vector<8x128xf32>,
    %c0_i32_8 = arith.constant 0 : i32
    %10 = arith.cmpi eq, %arg1, %c0_i32_8 : i32
    %11 = arith.extui %10 : i1 to i32
    %c0_i32_9 = arith.constant 0 : i32
    %12 = arith.cmpi ne, %11, %c0_i32_9 : i32
    scf.if %12 {
      %c0_10 = arith.constant 0 : index
      %c0_11 = arith.constant 0 : index
      %13 = vector.load %arg8[%c0_10, %c0_11] : memref<8x128xf32, #tpu.memory_space<vmem>>, vector<8x128xf32>
      %c0_12 = arith.constant 0 : index
      %c0_13 = arith.constant 0 : index
      %14 = vector.load %arg4[%c0_12, %c0_13] : memref<1x128xf32, #tpu.memory_space<vmem>>, vector<1x128xf32>
      %15 = vector.broadcast %14 : vector<1x128xf32> to vector<8x128xf32>
      %16 = arith.addf %13, %15 : vector<8x128xf32>
      %cst_14 = arith.constant 0.000000e+00 : f32
      %17 = vector.broadcast %cst_14 : f32 to vector<8x128xf32>
      %18 = arith.maximumf %16, %17 : vector<8x128xf32>
      %19 = arith.truncf %18 : vector<8x128xf32> to vector<8x128xbf16>
      %c0_15 = arith.constant 0 : index
      %c0_16 = arith.constant 0 : index
      %20 = vector.load %arg5[%c0_15, %c0_16] : memref<128x128xbf16, #tpu.memory_space<vmem>>, vector<128x128xbf16>
      %cst_17 = arith.constant dense<0.000000e+00> : vector<8x128xf32>
      %21 = tpu.matmul %19, %20, %cst_17 {dimension_numbers = #tpu.dot_dimension_numbers<[1], [0], [0], [1], [0, 0, 1, 1], [], []>} : vector<8x128xbf16>, vector<128x128xbf16>, vector<8x128xf32> -> vector<8x128xf32>
      %c0_18 = arith.constant 0 : index
      %c0_19 = arith.constant 0 : index
      %22 = vector.load %arg6[%c0_18, %c0_19] : memref<1x128xf32, #tpu.memory_space<vmem>>, vector<1x128xf32>
      %23 = vector.broadcast %22 : vector<1x128xf32> to vector<8x128xf32>
      %24 = arith.addf %21, %23 : vector<8x128xf32>
      %c0_20 = arith.constant 0 : index
      %c0_21 = arith.constant 0 : index
      %25 = vector.load %arg7[%c0_20, %c0_21] : memref<8x128xf32, #tpu.memory_space<vmem>>, vector<8x128xf32>
      tpu.vector_store %arg7[%c0_20, %c0_21], %24 {strides = array<i32>} : memref<8x128xf32, #tpu.memory_space<vmem>>, vector<8x128xf32>,
    } else {
    }
    return
  }
  func.func @transform_0(%arg0: i32, %arg1: i32) -> (i32, i32) {
    %c0_i32 = arith.constant 0 : i32
    return %arg0, %arg1 : i32, i32
  }
  func.func @transform_1(%arg0: i32, %arg1: i32) -> (i32, i32) {
    %c0_i32 = arith.constant 0 : i32
    %c0_i32_0 = arith.constant 0 : i32
    return %arg1, %c0_i32 : i32, i32
  }
  func.func @transform_2(%arg0: i32, %arg1: i32) -> (i32, i32) {
    %c0_i32 = arith.constant 0 : i32
    %c0_i32_0 = arith.constant 0 : i32
    %c0_i32_1 = arith.constant 0 : i32
    return %c0_i32, %c0_i32_0 : i32, i32
  }
  func.func @transform_3(%arg0: i32, %arg1: i32) -> (i32, i32) {
    %c0_i32 = arith.constant 0 : i32
    %c0_i32_0 = arith.constant 0 : i32
    %c0_i32_1 = arith.constant 0 : i32
    return %c0_i32, %c0_i32_0 : i32, i32
  }
  func.func @transform_4(%arg0: i32, %arg1: i32) -> (i32, i32) {
    %c0_i32 = arith.constant 0 : i32
    %c0_i32_0 = arith.constant 0 : i32
    %c0_i32_1 = arith.constant 0 : i32
    return %c0_i32, %c0_i32_0 : i32, i32
  }
  func.func @transform_5(%arg0: i32, %arg1: i32) -> (i32, i32) {
    %c0_i32 = arith.constant 0 : i32
    %c0_i32_0 = arith.constant 0 : i32
    return %arg0, %c0_i32 : i32, i32
  }
}

</mosaic_0001>

<bundles_post_ra>
// kernel: tpu_custom_call.1
= control target key start
LH: loop header
LB: loop body
LE: loop exit
PB: predicated region body
PF: predicated region fallthrough
CT: control target
= control target key end

     0   :  { %10 = vsyncpa [#allocation4], 0  ;;  %s609_s0 = inlined_call_operand.hbm [shape: f32[8,128], index: 0, kind: input, shape index: {}]   ;;  %s610_s1 = inlined_call_operand.hbm [shape: bf16[128,128], index: 1, kind: input, shape index: {}]   ;;  %s611_s2 = inlined_call_operand.vmem [shape: f32[1,128], index: 2, kind: input, shape index: {}]   ;;  %s612_s3 = inlined_call_operand.hbm [shape: bf16[128,128], index: 3, kind: input, shape index: {}]   ;;  %s613_s4 = inlined_call_operand.vmem [shape: f32[1,128], index: 4, kind: input, shape index: {}]   ;;  %s614_s5 = inlined_call_operand.hbm [shape: f32[8,128], index: 5, kind: output, shape index: {}]  }
   0x1   :  { %11 = vsyncpa [#allocation7], 0 }
   0x2   :  { %12 = vsyncpa [#allocation5], 0  ;;  %s511_s18 = smov [#allocation6]   ;;  %s417_s22 = scalar_lea.hbm %s610_s1, 1024 }
   0x3   :  { %s28_s19 = sshll.u32 %s511_s18, 4  ;;  %p418_p0 = scmp.ne.s32.totalorder %s610_s1, %s417_s22  ;;  %s29_s19 = int_to_ptr.vmem [resolvable:$true] %s28_s19 }
   0x4   :  { %p421_p1 = scmp.lt.u32.totalorder %s417_s22, %s610_s1 }
   0x6   :  { %p423_p2 = pnand %p421_p1, %p418_p0 }
   0x8   :  { %426 = shalt.err (!%p423_p2)
}
   0x9   :  { %s427_s27 = scalar_lea.vmem %s29_s19, 1024  ;;  %p432_p4 = scmp.lt.s32.totalorder %s29_s19, %s29_s19 }
   0xa   :  { %p428_p3 = scmp.ne.s32.totalorder %s29_s19, %s427_s27  ;;  %p433_p5 = scmp.lt.s32.totalorder %s427_s27, %s427_s27 }
   0xc   :  { %p434_p6 = por %p433_p5, %p432_p4 }
   0xe   :  { %p435_p7 = pnand %p434_p6, %p428_p3 }
  0x10   :  { %438 = shalt.err (!%p435_p7)
}
  0x11   :  { %s512_s28 = smov 64   ;;  %s513_s29 = smov 4  }
  0x12   :  { %34 = dma.hbm_to_vmem [thread:$0]  %s610_s1, 1024, %s29_s19, [#allocation7], %s512_s28, %s512_s28, %s513_s29  }
  0x13   :  { %s514_s7 = smov [#allocation3]   ;;  %s515_s9 = smov [#allocation8]  }
  0x14   :  { %s19_s8 = sshll.u32 %s514_s7, 4  ;;  %s42_s10 = sshll.u32 %s515_s9, 4  ;;  %s20_s8 = int_to_ptr.vmem [resolvable:$true] %s19_s8  ;;  %s43_s10 = int_to_ptr.vmem [resolvable:$true] %s42_s10 }
  0x15   :  { %s439_s13 = scalar_lea.hbm %s609_s0, 128 }
  0x16   :  { %p440_p8 = scmp.ne.s32.totalorder %s609_s0, %s439_s13  ;;  %p443_p9 = scmp.lt.u32.totalorder %s439_s13, %s609_s0 }
  0x18   :  { %p445_p10 = pnand %p443_p9, %p440_p8 }
  0x1a   :  { %448 = shalt.err (!%p445_p10)
}
  0x1b   :  { %s449_s1 = scalar_lea.vmem %s20_s8, 128  ;;  %p454_p12 = scmp.lt.s32.totalorder %s20_s8, %s20_s8 }
  0x1c   :  { %p450_p11 = scmp.ne.s32.totalorder %s20_s8, %s449_s1  ;;  %p455_p13 = scmp.lt.s32.totalorder %s449_s1, %s449_s1 }
  0x1e   :  { %p456_p0 = por %p455_p13, %p454_p12 }
  0x20   :  { %p457_p1 = pnand %p456_p0, %p450_p11 }
  0x22   :  { %460 = shalt.err (!%p457_p1)
}
  0x23   :  { %22 = dma.hbm_to_vmem [thread:$0]  %s609_s0, 128, %s20_s8, [#allocation4]  }
  0x24   :  { %s461_s22 = scalar_lea.hbm %s612_s3, 1024 }
  0x25   :  { %p462_p2 = scmp.ne.s32.totalorder %s612_s3, %s461_s22  ;;  %p465_p3 = scmp.lt.u32.totalorder %s461_s22, %s612_s3 }
  0x27   :  { %p467_p4 = pnand %p465_p3, %p462_p2 }
  0x29   :  { %470 = shalt.err (!%p467_p4)
}
  0x2a   :  { %s471_s27 = scalar_lea.vmem %s43_s10, 1024  ;;  %p476_p6 = scmp.lt.s32.totalorder %s43_s10, %s43_s10 }
  0x2b   :  { %p472_p5 = scmp.ne.s32.totalorder %s43_s10, %s471_s27  ;;  %p477_p7 = scmp.lt.s32.totalorder %s471_s27, %s471_s27 }
  0x2d   :  { %p478_p8 = por %p477_p7, %p476_p6 }
  0x2f   :  { %p479_p9 = pnand %p478_p8, %p472_p5 }
  0x31   :  { %482 = shalt.err (!%p479_p9)
}
  0x32   :  { %48 = dma.hbm_to_vmem [thread:$0]  %s612_s3, 1024, %s43_s10, [#allocation7], %s512_s28, %s512_s28, %s513_s29  }
  0x33   :  { %505 = dma.done.wait [#allocation4], 128  }
  0x34   :  { %506 = vsyncadd [#allocation4], 4294967168 }
  0x35   :  { %507 = dma.done.wait [#allocation7], 2048  }
  0x36   :  { %508 = vsyncadd [#allocation7], 4294965248  ;;  %v516_v0 = vmov 0.0   ;;  %vm517_vm0 = vmmov 0   ;;  %v401_v1 = vld [vmem:[#allocation6] sm:$0xff]   ;;  %v402_v2 = vld [vmem:[#allocation6 + $0x8] sm:$0xff]  }
  0x37   :  { %353 = vmatprep.subr.bf16.mxu0 %v516_v0  ;;  %369 = vmatprep.mubr.msk.bf16.mxu0 %vm517_vm0, %v516_v0  ;;  %v403_v3 = vld [vmem:[#allocation6 + $0x10] sm:$0xff]   ;;  %v409_v4 = vld [vmem:[#allocation8] sm:$0xff]   ;;  %v404_v5 = vld [vmem:[#allocation6 + $0x18] sm:$0xff]   ;;  %s518_s7 = smov [#allocation9]  }
  0x38   :  { %373 = vmatprep.subr.bf16.mxu1 %v516_v0  ;;  %389 = vmatprep.mubr.msk.bf16.mxu1 %vm517_vm0, %v516_v0  ;;  %v410_v6 = vld [vmem:[#allocation8 + $0x8] sm:$0xff]   ;;  %v405_v7 = vld [vmem:[#allocation6 + $0x20] sm:$0xff]   ;;  %v411_v8 = vld [vmem:[#allocation8 + $0x10] sm:$0xff]   ;;  %s307_s8 = sshll.u32 %s518_s7, 4  ;;  %s308_s8 = int_to_ptr.vmem [resolvable:$true] %s307_s8 }
  0x39   :  { %354 = vmatpush3.bf16.msra.mxu0 %v401_v1  ;;  %374 = vmatpush3.bf16.msra.mxu1 %v409_v4  ;;  %v406_v9 = vld [vmem:[#allocation6 + $0x28] sm:$0xff]   ;;  %v412_v10 = vld [vmem:[#allocation8 + $0x18] sm:$0xff]   ;;  %v407_v11 = vld [vmem:[#allocation6 + $0x30] sm:$0xff]   ;;  %p488_p11 = scmp.lt.s32.totalorder %s308_s8, %s308_s8 }
  0x3a   :  { %355 = vmatprep.subr.bf16.mxu0 %v516_v0  ;;  %375 = vmatprep.subr.bf16.mxu1 %v516_v0  ;;  %v413_v12 = vld [vmem:[#allocation8 + $0x20] sm:$0xff]   ;;  %v408_v13 = vld [vmem:[#allocation6 + $0x38] sm:$0xff]   ;;  %v414_v15 = vld [vmem:[#allocation8 + $0x28] sm:$0xff]  }
  0x3b   :  { %v67_v14 = vld [vmem:[#allocation3] sm:$0xff]  ;;  %v415_v17 = vld [vmem:[#allocation8 + $0x30] sm:$0xff]  }
  0x3c   :  { %v68_v16 = vpack.c.bf16 %v67_v14, %v67_v14  ;;  %v416_v18 = vld [vmem:[#allocation8 + $0x38] sm:$0xff]  }
  0x3d   :  { %356 = vmatpush3.bf16.msra.mxu0 %v402_v2  ;;  %376 = vmatpush3.bf16.msra.mxu1 %v410_v6  ;;  %v325_v19 = vld [vmem:[%s611_s2] ss:$0 sm:$0xff]  ;;  %s483_s2 = scalar_lea.vmem %s308_s8, 128 }
  0x3e   :  { %357 = vmatprep.subr.bf16.mxu0 %v516_v0  ;;  %377 = vmatprep.subr.bf16.mxu1 %v516_v0  ;;  %v326_v27 = vld [vmem:[%s613_s4] ss:$0 sm:$0xff]  ;;  %p484_p10 = scmp.ne.s32.totalorder %s308_s8, %s483_s2  ;;  %p489_p12 = scmp.lt.s32.totalorder %s483_s2, %s483_s2 }
  0x40   :  { %p490_p13 = por %p489_p12, %p488_p11 }
  0x41   :  { %358 = vmatpush3.bf16.msra.mxu0 %v403_v3  ;;  %378 = vmatpush3.bf16.msra.mxu1 %v411_v8 }
  0x42   :  { %359 = vmatprep.subr.bf16.mxu0 %v516_v0  ;;  %379 = vmatprep.subr.bf16.mxu1 %v516_v0  ;;  %p491_p0 = pnand %p490_p13, %p484_p10 }
  0x45   :  { %360 = vmatpush3.bf16.msra.mxu0 %v404_v5  ;;  %380 = vmatpush3.bf16.msra.mxu1 %v412_v10 }
  0x46   :  { %361 = vmatprep.subr.bf16.mxu0 %v516_v0  ;;  %381 = vmatprep.subr.bf16.mxu1 %v516_v0 }
  0x49   :  { %362 = vmatpush3.bf16.msra.mxu0 %v405_v7  ;;  %382 = vmatpush3.bf16.msra.mxu1 %v413_v12 }
  0x4a   :  { %363 = vmatprep.subr.bf16.mxu0 %v516_v0  ;;  %383 = vmatprep.subr.bf16.mxu1 %v516_v0 }
  0x4d   :  { %364 = vmatpush3.bf16.msra.mxu0 %v406_v9  ;;  %384 = vmatpush3.bf16.msra.mxu1 %v414_v15 }
  0x4e   :  { %365 = vmatprep.subr.bf16.mxu0 %v516_v0  ;;  %385 = vmatprep.subr.bf16.mxu1 %v516_v0 }
  0x51   :  { %366 = vmatpush3.bf16.msra.mxu0 %v407_v11  ;;  %386 = vmatpush3.bf16.msra.mxu1 %v415_v17 }
  0x52   :  { %367 = vmatprep.subr.bf16.mxu0 %v516_v0  ;;  %387 = vmatprep.subr.bf16.mxu1 %v516_v0 }
  0x55   :  { %368 = vmatpush3.bf16.msra.mxu0 %v408_v13  ;;  %388 = vmatpush3.bf16.msra.mxu1 %v416_v18 }
  0x58   :  { %370 = vmatmul.mubr.bf16.vlgmr.msra.gmra.mrb[0].mxu0 %v68_v16 }
 0x12b   :  { %v167_v20 = vpop.f32.mrb[0].mxu0 }
 0x12c   :  { %v186_v21 = vadd.f32 %v325_v19, %v167_v20  ;;  %v371_v22 = vpop.f32.mrb[1].mxu0 }
 0x12d   :  { %v170_v23 = vpop.f32.mrb[2].mxu0 }
 0x12e   :  { %v187_v24 = vmax.f32 %v186_v21, 0.0  ;;  %v372_v25 = vpop.f32.mrb[3].mxu0 }
 0x130   :  { %v188_v26 = vpack.c.bf16 %v187_v24, %v187_v24 }
 0x132   :  { %390 = vmatmul.mubr.bf16.vlgmr.msra.gmra.mrb[0].mxu1 %v188_v26 }
 0x205   :  { %v294_v28 = vpop.f32.mrb[0].mxu1 }
 0x206   :  { %v295_v29 = vadd.f32 %v326_v27, %v294_v28  ;;  %v391_v30 = vpop.f32.mrb[1].mxu1 }
 0x207   :  { %v297_v31 = vpop.f32.mrb[2].mxu1 }
 0x208   :  { %300 = vst [vmem:[#allocation9] sm:$0xff] %v295_v29  ;;  %v392_v32 = vpop.f32.mrb[3].mxu1 }
 0x209   :  { %494 = shalt.err (!%p491_p0)
}
 0x20a   :  { %s495_s4 = scalar_lea.hbm %s614_s5, 128 }
 0x20b   :  { %p496_p1 = scmp.ne.s32.totalorder %s614_s5, %s495_s4  ;;  %p499_p2 = scmp.lt.u32.totalorder %s495_s4, %s614_s5 }
 0x20d   :  { %p501_p3 = pnand %p499_p2, %p496_p1 }
 0x20f   :  { %504 = shalt.err (!%p501_p3)
}
 0x210   :  { %310 = dma.vmem_to_hbm [thread:$0]  %s308_s8, 128, %s614_s5, [#allocation5]  }
 0x211   :  { %509 = dma.done.wait [#allocation5], 128  }
 0x212   :  { %510 = vsyncadd [#allocation5], 4294967168 }
 0x213   :  { %314 = vsyncpa [#allocation4], 1 }
 0x214   :  { %315 = vsyncpa [#allocation7], 1 }
 0x215   :  { %316 = vsyncpa [#allocation5], 1 }

// kernel: tpu_custom_call.1
= control target key start
LH: loop header
LB: loop body
LE: loop exit
PB: predicated region body
PF: predicated region fallthrough
CT: control target
= control target key end

     0   :  { %10 = vsyncpa [#allocation4], 0  ;;  %s609_s0 = inlined_call_operand.hbm [shape: f32[8,128], index: 0, kind: input, shape index: {}]   ;;  %s610_s1 = inlined_call_operand.hbm [shape: bf16[128,128], index: 1, kind: input, shape index: {}]   ;;  %s611_s2 = inlined_call_operand.vmem [shape: f32[1,128], index: 2, kind: input, shape index: {}]   ;;  %s612_s3 = inlined_call_operand.hbm [shape: bf16[128,128], index: 3, kind: input, shape index: {}]   ;;  %s613_s4 = inlined_call_operand.vmem [shape: f32[1,128], index: 4, kind: input, shape index: {}]   ;;  %s614_s5 = inlined_call_operand.hbm [shape: f32[8,128], index: 5, kind: output, shape index: {}]  }
   0x1   :  { %11 = vsyncpa [#allocation7], 0 }
   0x2   :  { %12 = vsyncpa [#allocation5], 0  ;;  %s511_s18 = smov [#allocation6]   ;;  %s417_s22 = scalar_lea.hbm %s610_s1, 1024 }
   0x3   :  { %s28_s19 = sshll.u32 %s511_s18, 4  ;;  %p418_p0 = scmp.ne.s32.totalorder %s610_s1, %s417_s22  ;;  %s29_s19 = int_to_ptr.vmem [resolvable:$true] %s28_s19 }
   0x4   :  { %p421_p1 = scmp.lt.u32.totalorder %s417_s22, %s610_s1 }
   0x6   :  { %p423_p2 = pnand %p421_p1, %p418_p0 }
   0x8   :  { %426 = shalt.err (!%p423_p2)
}
   0x9   :  { %s427_s27 = scalar_lea.vmem %s29_s19, 1024  ;;  %p432_p4 = scmp.lt.s32.totalorder %s29_s19, %s29_s19 }
   0xa   :  { %p428_p3 = scmp.ne.s32.totalorder %s29_s19, %s427_s27  ;;  %p433_p5 = scmp.lt.s32.totalorder %s427_s27, %s427_s27 }
   0xc   :  { %p434_p6 = por %p433_p5, %p432_p4 }
   0xe   :  { %p435_p7 = pnand %p434_p6, %p428_p3 }
  0x10   :  { %438 = shalt.err (!%p435_p7)
}
  0x11   :  { %s512_s28 = smov 64   ;;  %s513_s29 = smov 4  }
  0x12   :  { %34 = dma.hbm_to_vmem [thread:$0]  %s610_s1, 1024, %s29_s19, [#allocation7], %s512_s28, %s512_s28, %s513_s29  }
  0x13   :  { %s514_s7 = smov [#allocation3]   ;;  %s515_s9 = smov [#allocation8]  }
  0x14   :  { %s19_s8 = sshll.u32 %s514_s7, 4  ;;  %s42_s10 = sshll.u32 %s515_s9, 4  ;;  %s20_s8 = int_to_ptr.vmem [resolvable:$true] %s19_s8  ;;  %s43_s10 = int_to_ptr.vmem [resolvable:$true] %s42_s10 }
  0x15   :  { %s439_s13 = scalar_lea.hbm %s609_s0, 128 }
  0x16   :  { %p440_p8 = scmp.ne.s32.totalorder %s609_s0, %s439_s13  ;;  %p443_p9 = scmp.lt.u32.totalorder %s439_s13, %s609_s0 }
  0x18   :  { %p445_p10 = pnand %p443_p9, %p440_p8 }
  0x1a   :  { %448 = shalt.err (!%p445_p10)
}
  0x1b   :  { %s449_s1 = scalar_lea.vmem %s20_s8, 128  ;;  %p454_p12 = scmp.lt.s32.totalorder %s20_s8, %s20_s8 }
  0x1c   :  { %p450_p11 = scmp.ne.s32.totalorder %s20_s8, %s449_s1  ;;  %p455_p13 = scmp.lt.s32.totalorder %s449_s1, %s449_s1 }
  0x1e   :  { %p456_p0 = por %p455_p13, %p454_p12 }
  0x20   :  { %p457_p1 = pnand %p456_p0, %p450_p11 }
  0x22   :  { %460 = shalt.err (!%p457_p1)
}
  0x23   :  { %22 = dma.hbm_to_vmem [thread:$0]  %s609_s0, 128, %s20_s8, [#allocation4]  }
  0x24   :  { %s461_s22 = scalar_lea.hbm %s612_s3, 1024 }
  0x25   :  { %p462_p2 = scmp.ne.s32.totalorder %s612_s3, %s461_s22  ;;  %p465_p3 = scmp.lt.u32.totalorder %s461_s22, %s612_s3 }
  0x27   :  { %p467_p4 = pnand %p465_p3, %p462_p2 }
  0x29   :  { %470 = shalt.err (!%p467_p4)
}
  0x2a   :  { %s471_s27 = scalar_lea.vmem %s43_s10, 1024  ;;  %p476_p6 = scmp.lt.s32.totalorder %s43_s10, %s43_s10 }
  0x2b   :  { %p472_p5 = scmp.ne.s32.totalorder %s43_s10, %s471_s27  ;;  %p477_p7 = scmp.lt.s32.totalorder %s471_s27, %s471_s27 }
  0x2d   :  { %p478_p8 = por %p477_p7, %p476_p6 }
  0x2f   :  { %p479_p9 = pnand %p478_p8, %p472_p5 }
  0x31   :  { %482 = shalt.err (!%p479_p9)
}
  0x32   :  { %48 = dma.hbm_to_vmem [thread:$0]  %s612_s3, 1024, %s43_s10, [#allocation7], %s512_s28, %s512_s28, %s513_s29  }
  0x33   :  { %505 = dma.done.wait [#allocation4], 128  }
  0x34   :  { %506 = vsyncadd [#allocation4], 4294967168 }
  0x35   :  { %507 = dma.done.wait [#allocation7], 2048  }
  0x36   :  { %508 = vsyncadd [#allocation7], 4294965248  ;;  %v516_v0 = vmov 0.0   ;;  %vm517_vm0 = vmmov 0   ;;  %v401_v1 = vld [vmem:[#allocation6] sm:$0xff]   ;;  %v402_v2 = vld [vmem:[#allocation6 + $0x8] sm:$0xff]  }
  0x37   :  { %353 = vmatprep.subr.bf16.mxu0 %v516_v0  ;;  %369 = vmatprep.mubr.msk.bf16.mxu0 %vm517_vm0, %v516_v0  ;;  %v403_v3 = vld [vmem:[#allocation6 + $0x10] sm:$0xff]   ;;  %v409_v4 = vld [vmem:[#allocation8] sm:$0xff]   ;;  %v404_v5 = vld [vmem:[#allocation6 + $0x18] sm:$0xff]   ;;  %s518_s7 = smov [#allocation9]  }
  0x38   :  { %373 = vmatprep.subr.bf16.mxu1 %v516_v0  ;;  %389 = vmatprep.mubr.msk.bf16.mxu1 %vm517_vm0, %v516_v0  ;;  %v410_v6 = vld [vmem:[#allocation8 + $0x8] sm:$0xff]   ;;  %v405_v7 = vld [vmem:[#allocation6 + $0x20] sm:$0xff]   ;;  %v411_v8 = vld [vmem:[#allocation8 + $0x10] sm:$0xff]   ;;  %s307_s8 = sshll.u32 %s518_s7, 4  ;;  %s308_s8 = int_to_ptr.vmem [resolvable:$true] %s307_s8 }
  0x39   :  { %354 = vmatpush3.bf16.msra.mxu0 %v401_v1  ;;  %374 = vmatpush3.bf16.msra.mxu1 %v409_v4  ;;  %v406_v9 = vld [vmem:[#allocation6 + $0x28] sm:$0xff]   ;;  %v412_v10 = vld [vmem:[#allocation8 + $0x18] sm:$0xff]   ;;  %v407_v11 = vld [vmem:[#allocation6 + $0x30] sm:$0xff]   ;;  %p488_p11 = scmp.lt.s32.totalorder %s308_s8, %s308_s8 }
  0x3a   :  { %355 = vmatprep.subr.bf16.mxu0 %v516_v0  ;;  %375 = vmatprep.subr.bf16.mxu1 %v516_v0  ;;  %v413_v12 = vld [vmem:[#allocation8 + $0x20] sm:$0xff]   ;;  %v408_v13 = vld [vmem:[#allocation6 + $0x38] sm:$0xff]   ;;  %v414_v15 = vld [vmem:[#allocation8 + $0x28] sm:$0xff]  }
  0x3b   :  { %v67_v14 = vld [vmem:[#allocation3] sm:$0xff]  ;;  %v415_v17 = vld [vmem:[#allocation8 + $0x30] sm:$0xff]  }
  0x3c   :  { %v68_v16 = vpack.c.bf16 %v67_v14, %v67_v14  ;;  %v416_v18 = vld [vmem:[#allocation8 + $0x38] sm:$0xff]  }
  0x3d   :  { %356 = vmatpush3.bf16.msra.mxu0 %v402_v2  ;;  %376 = vmatpush3.bf16.msra.mxu1 %v410_v6  ;;  %v325_v19 = vld [vmem:[%s611_s2] ss:$0 sm:$0xff]  ;;  %s483_s2 = scalar_lea.vmem %s308_s8, 128 }
  0x3e   :  { %357 = vmatprep.subr.bf16.mxu0 %v516_v0  ;;  %377 = vmatprep.subr.bf16.mxu1 %v516_v0  ;;  %v326_v27 = vld [vmem:[%s613_s4] ss:$0 sm:$0xff]  ;;  %p484_p10 = scmp.ne.s32.totalorder %s308_s8, %s483_s2  ;;  %p489_p12 = scmp.lt.s32.totalorder %s483_s2, %s483_s2 }
  0x40   :  { %p490_p13 = por %p489_p12, %p488_p11 }
  0x41   :  { %358 = vmatpush3.bf16.msra.mxu0 %v403_v3  ;;  %378 = vmatpush3.bf16.msra.mxu1 %v411_v8 }
  0x42   :  { %359 = vmatprep.subr.bf16.mxu0 %v516_v0  ;;  %379 = vmatprep.subr.bf16.mxu1 %v516_v0  ;;  %p491_p0 = pnand %p490_p13, %p484_p10 }
  0x45   :  { %360 = vmatpush3.bf16.msra.mxu0 %v404_v5  ;;  %380 = vmatpush3.bf16.msra.mxu1 %v412_v10 }
  0x46   :  { %361 = vmatprep.subr.bf16.mxu0 %v516_v0  ;;  %381 = vmatprep.subr.bf16.mxu1 %v516_v0 }
  0x49   :  { %362 = vmatpush3.bf16.msra.mxu0 %v405_v7  ;;  %382 = vmatpush3.bf16.msra.mxu1 %v413_v12 }
  0x4a   :  { %363 = vmatprep.subr.bf16.mxu0 %v516_v0  ;;  %383 = vmatprep.subr.bf16.mxu1 %v516_v0 }
  0x4d   :  { %364 = vmatpush3.bf16.msra.mxu0 %v406_v9  ;;  %384 = vmatpush3.bf16.msra.mxu1 %v414_v15 }
  0x4e   :  { %365 = vmatprep.subr.bf16.mxu0 %v516_v0  ;;  %385 = vmatprep.subr.bf16.mxu1 %v516_v0 }
  0x51   :  { %366 = vmatpush3.bf16.msra.mxu0 %v407_v11  ;;  %386 = vmatpush3.bf16.msra.mxu1 %v415_v17 }
  0x52   :  { %367 = vmatprep.subr.bf16.mxu0 %v516_v0  ;;  %387 = vmatprep.subr.bf16.mxu1 %v516_v0 }
  0x55   :  { %368 = vmatpush3.bf16.msra.mxu0 %v408_v13  ;;  %388 = vmatpush3.bf16.msra.mxu1 %v416_v18 }
  0x58   :  { %370 = vmatmul.mubr.bf16.vlgmr.msra.gmra.mrb[0].mxu0 %v68_v16 }
 0x12b   :  { %v167_v20 = vpop.f32.mrb[0].mxu0 }
 0x12c   :  { %v186_v21 = vadd.f32 %v325_v19, %v167_v20  ;;  %v371_v22 = vpop.f32.mrb[1].mxu0 }
 0x12d   :  { %v170_v23 = vpop.f32.mrb[2].mxu0 }
 0x12e   :  { %v187_v24 = vmax.f32 %v186_v21, 0.0  ;;  %v372_v25 = vpop.f32.mrb[3].mxu0 }
 0x130   :  { %v188_v26 = vpack.c.bf16 %v187_v24, %v187_v24 }
 0x132   :  { %390 = vmatmul.mubr.bf16.vlgmr.msra.gmra.mrb[0].mxu1 %v188_v26 }
 0x205   :  { %v294_v28 = vpop.f32.mrb[0].mxu1 }
 0x206   :  { %v295_v29 = vadd.f32 %v326_v27, %v294_v28  ;;  %v391_v30 = vpop.f32.mrb[1].mxu1 }
 0x207   :  { %v297_v31 = vpop.f32.mrb[2].mxu1 }
 0x208   :  { %300 = vst [vmem:[#allocation9] sm:$0xff] %v295_v29  ;;  %v392_v32 = vpop.f32.mrb[3].mxu1 }
 0x209   :  { %494 = shalt.err (!%p491_p0)
}
 0x20a   :  { %s495_s4 = scalar_lea.hbm %s614_s5, 128 }
 0x20b   :  { %p496_p1 = scmp.ne.s32.totalorder %s614_s5, %s495_s4  ;;  %p499_p2 = scmp.lt.u32.totalorder %s495_s4, %s614_s5 }
 0x20d   :  { %p501_p3 = pnand %p499_p2, %p496_p1 }
 0x20f   :  { %504 = shalt.err (!%p501_p3)
}
 0x210   :  { %310 = dma.vmem_to_hbm [thread:$0]  %s308_s8, 128, %s614_s5, [#allocation5]  }
 0x211   :  { %509 = dma.done.wait [#allocation5], 128  }
 0x212   :  { %510 = vsyncadd [#allocation5], 4294967168 }
 0x213   :  { %314 = vsyncpa [#allocation4], 1 }
 0x214   :  { %315 = vsyncpa [#allocation7], 1 }
 0x215   :  { %316 = vsyncpa [#allocation5], 1 }

</bundles_post_ra>
